<compile_context>
chip_gen: v7x
topology: tpu7x:2x2x1
jax: 0.10.0
libtpu: 0.0.40
codegen_flags: <defaults>
</compile_context>

<pallas_src>
import numpy as np

import jax
import jax.numpy as jnp
from jax import lax
from jax.experimental import pallas as pl
from jax.experimental.pallas import tpu as pltpu


# ---------------------------------------------------------------------------
# Host-side constant construction (done once per input shape, pure numpy)
# ---------------------------------------------------------------------------
def _build_banded_weight(w_khkwcico, w_in, wo, stride, k, pad):
    """B of shape (k*w_in*cin, wo*cout) s.t. conv-over-width is a matmul.

    B[kh][ (ow*s + kw - pad)*cin + ci , ow*cout + co ] = w[kh, kw, ci, co]
    (entries whose input column falls outside [0, w_in) are left at zero,
    which implements the zero padding along W).
    """
    _, _, cin, cout = w_khkwcico.shape
    B = np.zeros((k * w_in * cin, wo * cout), np.float32)
    for kh in range(k):
        base = kh * w_in * cin
        for kw in range(k):
            for ow in range(wo):
                wi = ow * stride + kw - pad
                if 0 <= wi < w_in:
                    r0 = base + wi * cin
                    B[r0:r0 + cin, ow * cout:(ow + 1) * cout] = w_khkwcico[kh, kw]
    return B


def _build_row_select(ho, h_in, stride, k, pad, nb):
    """Block-diagonal 0/1 matrix (k*nb*ho, nb*h_in).

    Slab kh, image n, output row oh gathers input row oh*s + kh - pad of
    image n (out-of-range rows are all-zero => zero padding along H).
    Row order inside a slab is (n, oh) so the gathered rows are already in
    the stacked layout expected by the next block.
    """
    S = np.zeros((k * nb * ho, nb * h_in), np.float32)
    for kh in range(k):
        for n in range(nb):
            for oh in range(ho):
                r = oh * stride + kh - pad
                if 0 <= r < h_in:
                    S[kh * nb * ho + n * ho + oh, n * h_in + r] = 1.0
    return S


# ---------------------------------------------------------------------------
# Fused whole-network Pallas kernel (closure over static per-block geometry)
# ---------------------------------------------------------------------------
def _make_fused_kernel(metas, k, nb):
    num_blocks = len(metas)

    def kernel(*refs):
        x_ref = refs[0]
        sel_refs = refs[1:1 + num_blocks]
        b_refs = refs[1 + num_blocks:1 + 2 * num_blocks]
        bias_refs = refs[1 + 2 * num_blocks:1 + 3 * num_blocks]
        o_ref = refs[1 + 3 * num_blocks]

        m0 = metas[0]
        # (nb, H0, W0*C0) -> stacked 2-D (nb*H0, W0*C0); lane dim unchanged.
        act = x_ref[...].reshape(nb * m0["h_in"], m0["w_in"] * m0["cin"])

        for bi, m in enumerate(metas):
            ho, cout = m["ho"], m["cout"]
            slab = m["w_in"] * m["cin"]           # rows of one kh slab of B
            rows = nb * ho                         # rows of one kh slab of allrows
            # Row gather (+ H padding + stride) for ALL nb images as one matmul.
            allrows = jnp.dot(sel_refs[bi][...], act,
                              preferred_element_type=jnp.float32)  # (k*nb*Ho, Win*Cin)
            out = None
            for kh in range(k):
                term = jnp.dot(allrows[kh * rows:(kh + 1) * rows, :],
                               b_refs[bi][kh * slab:(kh + 1) * slab, :],
                               preferred_element_type=jnp.float32)
                out = term if out is None else out + term
            # BN scale is pre-folded into B; add folded bias then ReLU.
            act = jnp.maximum(out + bias_refs[bi][...], 0.0)       # (nb*Ho, Wo*Cout)

        ml = metas[-1]
        o_ref[...] = act.reshape(nb, ml["ho"], ml["wo"] * ml["cout"]).astype(o_ref.dtype)

    return kernel


# ---------------------------------------------------------------------------
# EncoderNet in JAX (parameters built deterministically in-script)
# ---------------------------------------------------------------------------
class EncoderNet:
    def __init__(self, args, key):
        self.args = args
        self.k = int(args['kernel_size'])
        use_bn = args['use_bn']
        assert args['act'] == 'relu'  # TODO(synk): other activations
        eps = 1e-5
        k = self.k

        # Per conv block: BN-folded OIHW weights + folded bias + stride.
        self.blocks = []
        inplanes = args['in_ch']
        for i, planes in enumerate(args['layer_channels']):
            for j in range(args['block_nums'][i]):
                cin = inplanes if j == 0 else planes
                stride = args['strides'][i] if j == 0 else 1
                key, kw_, kb_, kg_, kbe_, km_, kv_ = jax.random.split(key, 7)
                w = 0.1 * jax.random.normal(kw_, (planes, cin, k, k), jnp.float32)
                conv_bias = (jnp.zeros((planes,), jnp.float32) if use_bn else
                             0.1 * jax.random.normal(kb_, (planes,), jnp.float32))
                if use_bn:
                    gamma = 1.0 + 0.1 * jax.random.normal(kg_, (planes,), jnp.float32)
                    beta = 0.1 * jax.random.normal(kbe_, (planes,), jnp.float32)
                    mean = 0.05 * jax.random.normal(km_, (planes,), jnp.float32)
                    var = 1.0 + 0.1 * jax.random.uniform(kv_, (planes,), jnp.float32)
                    scale = gamma / jnp.sqrt(var + eps)
                    bias = (conv_bias - mean) * scale + beta
                else:
                    scale = jnp.ones((planes,), jnp.float32)
                    bias = conv_bias
                # Fold BN scale into the conv weights (per-output-channel).
                w_folded = w * scale[:, None, None, None]
                self.blocks.append(dict(
                    w_oihw=np.asarray(w_folded, np.float32),
                    bias=np.asarray(bias, np.float32),
                    stride=int(stride), cin=int(cin), cout=int(planes)))
            inplanes = planes
        self._plan_cache = {}

    # -- how many images to stack per grid step -------------------------------
    def _choose_nb(self, N, H):
        best = 1
        for nb in range(1, min(N, 8) + 1):
            if N % nb:
                continue
            if N >= 2 and N // nb < 2:
                continue  # keep >= 2 grid steps so megacore can shard the batch
            # keep the block-diagonal row-select matrices small in VMEM
            if (self.k * nb * H) * (nb * H) * 4 > (4 << 20):
                continue
            best = nb
        return best

    # -- build the fused pallas_call + constants for a given input shape -----
    def _build_plan(self, N, H, W):
        ck = (N, H, W)
        if ck in self._plan_cache:
            return self._plan_cache[ck]
        k, p = self.k, self.k // 2
        nb = self._choose_nb(N, H)

        metas, sels, Bs, biases = [], [], [], []
        h_in, w_in = H, W
        for blk in self.blocks:
            s, cin, cout = blk['stride'], blk['cin'], blk['cout']
            ho = (h_in + 2 * p - k) // s + 1
            wo = (w_in + 2 * p - k) // s + 1
            w_khkwcico = np.transpose(blk['w_oihw'], (2, 3, 1, 0))  # (k,k,Cin,Cout)
            Bs.append(jnp.asarray(
                _build_banded_weight(w_khkwcico, w_in, wo, s, k, p)))
            sels.append(jnp.asarray(_build_row_select(ho, h_in, s, k, p, nb)))
            biases.append(jnp.asarray(
                np.tile(blk['bias'], wo).reshape(1, wo * cout)))
            metas.append(dict(h_in=h_in, w_in=w_in, cin=cin, cout=cout,
                              ho=ho, wo=wo, stride=s))
            h_in, w_in = ho, wo

        m0, ml = metas[0], metas[-1]
        # Input / output blocks keep the last two dims at full extent, so the
        # (8,128) divisibility rule is always satisfied regardless of shape.
        in_specs = [pl.BlockSpec((nb, m0['h_in'], m0['w_in'] * m0['cin']),
                                 lambda g: (g, 0, 0))]
        consts = sels + Bs + biases
        for a in consts:
            # Constant blocks never change across the grid -> stay VMEM-resident.
            in_specs.append(pl.BlockSpec(a.shape, lambda g: (0, 0)))
        out_specs = pl.BlockSpec((nb, ml['ho'], ml['wo'] * ml['cout']),
                                 lambda g: (g, 0, 0))
        out_shape = jax.ShapeDtypeStruct((N, ml['ho'], ml['wo'] * ml['cout']),
                                         jnp.float32)

        fn = pl.pallas_call(
            _make_fused_kernel(metas, k, nb),
            out_shape=out_shape,
            grid=(N // nb,),
            in_specs=in_specs,
            out_specs=out_specs,
            compiler_params=pltpu.CompilerParams(
                dimension_semantics=("parallel",)),
        )
        plan = (fn, consts, (ml['ho'], ml['wo'], ml['cout']))
        self._plan_cache[ck] = plan
        return plan

    # -- forward --------------------------------------------------------------
    def __call__(self, x_nchw):
        """x_nchw: (N, C, H, W) float32 -> (N, C_out, H', W') float32."""
        N, C, H, W = x_nchw.shape
        assert C == self.blocks[0]['cin']
        fn, consts, (ho, wo, cout) = self._build_plan(N, H, W)
        # NCHW -> NHWC -> 2-D per image: rows = H, columns = W*C (channel minor).
        x2 = jnp.transpose(x_nchw, (0, 2, 3, 1)).reshape(N, H, W * C)
        out2 = fn(x2, *consts)                         # (N, Ho, Wo*Cout) lane dense
        out = out2.reshape(N, ho, wo, cout)
        return jnp.transpose(out, (0, 3, 1, 2))        # NHWC -> NCHW

    # -- pure-JAX reference (no Pallas) for correctness check -----------------
    def reference(self, x_nchw):
        y = x_nchw
        p = self.k // 2
        for blk in self.blocks:
            w = jnp.asarray(blk['w_oihw'])
            b = jnp.asarray(blk['bias'])
            s = blk['stride']
            y = lax.conv_general_dilated(
                y, w, (s, s), [(p, p), (p, p)],
                dimension_numbers=('NCHW', 'OIHW', 'NCHW'))
            y = jnp.maximum(y + b[None, :, None, None], 0.0)
        return y


if __name__ == "__main__":
    args = {
        'in_ch': 4,
        'layer_channels': [8, 16],
        'kernel_size': 3,
        'strides': [2, 1],
        'block_nums': [1, 2],
        'use_bn': True,
        'act': 'relu',
    }

    key = jax.random.PRNGKey(0)
    key, kx, kx2, kp = jax.random.split(key, 4)
    net = EncoderNet(args, kp)

    # Primary check (batch=2 -> one image per grid step, both cores busy).
    x = jax.random.normal(kx, (2, 4, 16, 16), jnp.float32)  # NCHW like PyTorch
    out = jax.block_until_ready(net(x))
    ref = jax.block_until_ready(net.reference(x))
    assert out.shape == (2, 16, 8, 8), out.shape
    assert jnp.allclose(out, ref, atol=1e-4, rtol=1e-4), \
        float(jnp.max(jnp.abs(out - ref)))

    # Second check exercising the stacked (nb > 1) path (batch=4 -> 2 imgs/step).
    xb = jax.random.normal(kx2, (4, 4, 16, 16), jnp.float32)
    outb = jax.block_until_ready(net(xb))
    refb = jax.block_until_ready(net.reference(xb))
    assert outb.shape == (4, 16, 8, 8), outb.shape
    assert jnp.allclose(outb, refb, atol=1e-4, rtol=1e-4), \
        float(jnp.max(jnp.abs(outb - refb)))

    print("KERNEL_OK")
</pallas_src>

<mosaic_0001>
module attributes {stable_mosaic.version = 11 : i64} {
  func.func @kernel(%arg0: i32, %arg1: memref<1x16x64xf32, #tpu.memory_space<vmem>>, %arg2: memref<24x16xf32, #tpu.memory_space<vmem>>, %arg3: memref<24x8xf32, #tpu.memory_space<vmem>>, %arg4: memref<24x8xf32, #tpu.memory_space<vmem>>, %arg5: memref<192x64xf32, #tpu.memory_space<vmem>>, %arg6: memref<192x128xf32, #tpu.memory_space<vmem>>, %arg7: memref<384x128xf32, #tpu.memory_space<vmem>>, %arg8: memref<1x64xf32, #tpu.memory_space<vmem>>, %arg9: memref<1x128xf32, #tpu.memory_space<vmem>>, %arg10: memref<1x128xf32, #tpu.memory_space<vmem>>, %arg11: memref<1x8x128xf32, #tpu.memory_space<vmem>>) attributes {dimension_semantics = [#tpu.dimension_semantics<parallel>], iteration_bounds = array<i64: 2>, scalar_prefetch = 0 : i64, scratch_operands = 0 : i64, tpu.core_type = #tpu.core_type<tc>, window_params = [{transform_indices = @transform_0, window_bounds = array<i64: 1, 16, 64>}, {pipeline_mode = #tpu.pipeline_mode<synchronous>, transform_indices = @transform_1, window_bounds = array<i64: 24, 16>}, {pipeline_mode = #tpu.pipeline_mode<synchronous>, transform_indices = @transform_2, window_bounds = array<i64: 24, 8>}, {pipeline_mode = #tpu.pipeline_mode<synchronous>, transform_indices = @transform_3, window_bounds = array<i64: 24, 8>}, {pipeline_mode = #tpu.pipeline_mode<synchronous>, transform_indices = @transform_4, window_bounds = array<i64: 192, 64>}, {pipeline_mode = #tpu.pipeline_mode<synchronous>, transform_indices = @transform_5, window_bounds = array<i64: 192, 128>}, {pipeline_mode = #tpu.pipeline_mode<synchronous>, transform_indices = @transform_6, window_bounds = array<i64: 384, 128>}, {pipeline_mode = #tpu.pipeline_mode<synchronous>, transform_indices = @transform_7, window_bounds = array<i64: 1, 64>}, {pipeline_mode = #tpu.pipeline_mode<synchronous>, transform_indices = @transform_8, window_bounds = array<i64: 1, 128>}, {pipeline_mode = #tpu.pipeline_mode<synchronous>, transform_indices = @transform_9, window_bounds = array<i64: 1, 128>}, {transform_indices = @transform_10, window_bounds = array<i64: 1, 8, 128>}]} {
    %c0 = arith.constant 0 : index
    %c0_0 = arith.constant 0 : index
    %c0_1 = arith.constant 0 : index
    %0 = vector.load %arg1[%c0, %c0_0, %c0_1] : memref<1x16x64xf32, #tpu.memory_space<vmem>>, vector<1x16x64xf32>
    %1 = vector.shape_cast %0 : vector<1x16x64xf32> to vector<16x64xf32>
    %c0_2 = arith.constant 0 : index
    %c0_3 = arith.constant 0 : index
    %2 = vector.load %arg2[%c0_2, %c0_3] : memref<24x16xf32, #tpu.memory_space<vmem>>, vector<24x16xf32>
    %cst = arith.constant dense<0.000000e+00> : vector<24x64xf32>
    %3 = tpu.matmul %2, %1, %cst {dimension_numbers = #tpu.dot_dimension_numbers<[1], [0], [0], [1], [0, 0, 1, 1], [], []>} : vector<24x16xf32>, vector<16x64xf32>, vector<24x64xf32> -> vector<24x64xf32>
    %4 = vector.extract_strided_slice %3 {offsets = [0, 0], sizes = [8, 64], strides = [1, 1]} : vector<24x64xf32> to vector<8x64xf32>
    %c0_4 = arith.constant 0 : index
    %c0_5 = arith.constant 0 : index
    %5 = vector.load %arg5[%c0_4, %c0_5] : memref<192x64xf32, #tpu.memory_space<vmem>>, vector<64x64xf32>
    %cst_6 = arith.constant dense<0.000000e+00> : vector<8x64xf32>
    %6 = tpu.matmul %4, %5, %cst_6 {dimension_numbers = #tpu.dot_dimension_numbers<[1], [0], [0], [1], [0, 0, 1, 1], [], []>} : vector<8x64xf32>, vector<64x64xf32>, vector<8x64xf32> -> vector<8x64xf32>
    %7 = vector.extract_strided_slice %3 {offsets = [8, 0], sizes = [8, 64], strides = [1, 1]} : vector<24x64xf32> to vector<8x64xf32>
    %c64 = arith.constant 64 : index
    %c0_7 = arith.constant 0 : index
    %8 = vector.load %arg5[%c64, %c0_7] : memref<192x64xf32, #tpu.memory_space<vmem>>, vector<64x64xf32>
    %cst_8 = arith.constant dense<0.000000e+00> : vector<8x64xf32>
    %9 = tpu.matmul %7, %8, %cst_8 {dimension_numbers = #tpu.dot_dimension_numbers<[1], [0], [0], [1], [0, 0, 1, 1], [], []>} : vector<8x64xf32>, vector<64x64xf32>, vector<8x64xf32> -> vector<8x64xf32>
    %10 = arith.addf %6, %9 : vector<8x64xf32>
    %11 = vector.extract_strided_slice %3 {offsets = [16, 0], sizes = [8, 64], strides = [1, 1]} : vector<24x64xf32> to vector<8x64xf32>
    %c128 = arith.constant 128 : index
    %c0_9 = arith.constant 0 : index
    %12 = vector.load %arg5[%c128, %c0_9] : memref<192x64xf32, #tpu.memory_space<vmem>>, vector<64x64xf32>
    %cst_10 = arith.constant dense<0.000000e+00> : vector<8x64xf32>
    %13 = tpu.matmul %11, %12, %cst_10 {dimension_numbers = #tpu.dot_dimension_numbers<[1], [0], [0], [1], [0, 0, 1, 1], [], []>} : vector<8x64xf32>, vector<64x64xf32>, vector<8x64xf32> -> vector<8x64xf32>
    %14 = arith.addf %10, %13 : vector<8x64xf32>
    %c0_11 = arith.constant 0 : index
    %c0_12 = arith.constant 0 : index
    %15 = vector.load %arg8[%c0_11, %c0_12] : memref<1x64xf32, #tpu.memory_space<vmem>>, vector<1x64xf32>
    %16 = vector.broadcast %15 : vector<1x64xf32> to vector<8x64xf32>
    %17 = arith.addf %14, %16 : vector<8x64xf32>
    %cst_13 = arith.constant 0.000000e+00 : f32
    %18 = vector.broadcast %cst_13 : f32 to vector<8x64xf32>
    %19 = arith.maximumf %17, %18 : vector<8x64xf32>
    %c0_14 = arith.constant 0 : index
    %c0_15 = arith.constant 0 : index
    %20 = vector.load %arg3[%c0_14, %c0_15] : memref<24x8xf32, #tpu.memory_space<vmem>>, vector<24x8xf32>
    %cst_16 = arith.constant dense<0.000000e+00> : vector<24x64xf32>
    %21 = tpu.matmul %20, %19, %cst_16 {dimension_numbers = #tpu.dot_dimension_numbers<[1], [0], [0], [1], [0, 0, 1, 1], [], []>} : vector<24x8xf32>, vector<8x64xf32>, vector<24x64xf32> -> vector<24x64xf32>
    %22 = vector.extract_strided_slice %21 {offsets = [0, 0], sizes = [8, 64], strides = [1, 1]} : vector<24x64xf32> to vector<8x64xf32>
    %c0_17 = arith.constant 0 : index
    %c0_18 = arith.constant 0 : index
    %23 = vector.load %arg6[%c0_17, %c0_18] : memref<192x128xf32, #tpu.memory_space<vmem>>, vector<64x128xf32>
    %cst_19 = arith.constant dense<0.000000e+00> : vector<8x128xf32>
    %24 = tpu.matmul %22, %23, %cst_19 {dimension_numbers = #tpu.dot_dimension_numbers<[1], [0], [0], [1], [0, 0, 1, 1], [], []>} : vector<8x64xf32>, vector<64x128xf32>, vector<8x128xf32> -> vector<8x128xf32>
    %25 = vector.extract_strided_slice %21 {offsets = [8, 0], sizes = [8, 64], strides = [1, 1]} : vector<24x64xf32> to vector<8x64xf32>
    %c64_20 = arith.constant 64 : index
    %c0_21 = arith.constant 0 : index
    %26 = vector.load %arg6[%c64_20, %c0_21] : memref<192x128xf32, #tpu.memory_space<vmem>>, vector<64x128xf32>
    %cst_22 = arith.constant dense<0.000000e+00> : vector<8x128xf32>
    %27 = tpu.matmul %25, %26, %cst_22 {dimension_numbers = #tpu.dot_dimension_numbers<[1], [0], [0], [1], [0, 0, 1, 1], [], []>} : vector<8x64xf32>, vector<64x128xf32>, vector<8x128xf32> -> vector<8x128xf32>
    %28 = arith.addf %24, %27 : vector<8x128xf32>
    %29 = vector.extract_strided_slice %21 {offsets = [16, 0], sizes = [8, 64], strides = [1, 1]} : vector<24x64xf32> to vector<8x64xf32>
    %c128_23 = arith.constant 128 : index
    %c0_24 = arith.constant 0 : index
    %30 = vector.load %arg6[%c128_23, %c0_24] : memref<192x128xf32, #tpu.memory_space<vmem>>, vector<64x128xf32>
    %cst_25 = arith.constant dense<0.000000e+00> : vector<8x128xf32>
    %31 = tpu.matmul %29, %30, %cst_25 {dimension_numbers = #tpu.dot_dimension_numbers<[1], [0], [0], [1], [0, 0, 1, 1], [], []>} : vector<8x64xf32>, vector<64x128xf32>, vector<8x128xf32> -> vector<8x128xf32>
    %32 = arith.addf %28, %31 : vector<8x128xf32>
    %c0_26 = arith.constant 0 : index
    %c0_27 = arith.constant 0 : index
    %33 = vector.load %arg9[%c0_26, %c0_27] : memref<1x128xf32, #tpu.memory_space<vmem>>, vector<1x128xf32>
    %34 = vector.broadcast %33 : vector<1x128xf32> to vector<8x128xf32>
    %35 = arith.addf %32, %34 : vector<8x128xf32>
    %cst_28 = arith.constant 0.000000e+00 : f32
    %36 = vector.broadcast %cst_28 : f32 to vector<8x128xf32>
    %37 = arith.maximumf %35, %36 : vector<8x128xf32>
    %c0_29 = arith.constant 0 : index
    %c0_30 = arith.constant 0 : index
    %38 = vector.load %arg4[%c0_29, %c0_30] : memref<24x8xf32, #tpu.memory_space<vmem>>, vector<24x8xf32>
    %cst_31 = arith.constant dense<0.000000e+00> : vector<24x128xf32>
    %39 = tpu.matmul %38, %37, %cst_31 {dimension_numbers = #tpu.dot_dimension_numbers<[1], [0], [0], [1], [0, 0, 1, 1], [], []>} : vector<24x8xf32>, vector<8x128xf32>, vector<24x128xf32> -> vector<24x128xf32>
    %40 = vector.extract_strided_slice %39 {offsets = [0, 0], sizes = [8, 128], strides = [1, 1]} : vector<24x128xf32> to vector<8x128xf32>
    %c0_32 = arith.constant 0 : index
    %c0_33 = arith.constant 0 : index
    %41 = vector.load %arg7[%c0_32, %c0_33] : memref<384x128xf32, #tpu.memory_space<vmem>>, vector<128x128xf32>
    %cst_34 = arith.constant dense<0.000000e+00> : vector<8x128xf32>
    %42 = tpu.matmul %40, %41, %cst_34 {dimension_numbers = #tpu.dot_dimension_numbers<[1], [0], [0], [1], [0, 0, 1, 1], [], []>} : vector<8x128xf32>, vector<128x128xf32>, vector<8x128xf32> -> vector<8x128xf32>
    %43 = vector.extract_strided_slice %39 {offsets = [8, 0], sizes = [8, 128], strides = [1, 1]} : vector<24x128xf32> to vector<8x128xf32>
    %c128_35 = arith.constant 128 : index
    %c0_36 = arith.constant 0 : index
    %44 = vector.load %arg7[%c128_35, %c0_36] : memref<384x128xf32, #tpu.memory_space<vmem>>, vector<128x128xf32>
    %cst_37 = arith.constant dense<0.000000e+00> : vector<8x128xf32>
    %45 = tpu.matmul %43, %44, %cst_37 {dimension_numbers = #tpu.dot_dimension_numbers<[1], [0], [0], [1], [0, 0, 1, 1], [], []>} : vector<8x128xf32>, vector<128x128xf32>, vector<8x128xf32> -> vector<8x128xf32>
    %46 = arith.addf %42, %45 : vector<8x128xf32>
    %47 = vector.extract_strided_slice %39 {offsets = [16, 0], sizes = [8, 128], strides = [1, 1]} : vector<24x128xf32> to vector<8x128xf32>
    %c256 = arith.constant 256 : index
    %c0_38 = arith.constant 0 : index
    %48 = vector.load %arg7[%c256, %c0_38] : memref<384x128xf32, #tpu.memory_space<vmem>>, vector<128x128xf32>
    %cst_39 = arith.constant dense<0.000000e+00> : vector<8x128xf32>
    %49 = tpu.matmul %47, %48, %cst_39 {dimension_numbers = #tpu.dot_dimension_numbers<[1], [0], [0], [1], [0, 0, 1, 1], [], []>} : vector<8x128xf32>, vector<128x128xf32>, vector<8x128xf32> -> vector<8x128xf32>
    %50 = arith.addf %46, %49 : vector<8x128xf32>
    %c0_40 = arith.constant 0 : index
    %c0_41 = arith.constant 0 : index
    %51 = vector.load %arg10[%c0_40, %c0_41] : memref<1x128xf32, #tpu.memory_space<vmem>>, vector<1x128xf32>
    %52 = vector.broadcast %51 : vector<1x128xf32> to vector<8x128xf32>
    %53 = arith.addf %50, %52 : vector<8x128xf32>
    %cst_42 = arith.constant 0.000000e+00 : f32
    %54 = vector.broadcast %cst_42 : f32 to vector<8x128xf32>
    %55 = arith.maximumf %53, %54 : vector<8x128xf32>
    %56 = vector.shape_cast %55 : vector<8x128xf32> to vector<1x8x128xf32>
    %c0_43 = arith.constant 0 : index
    %c0_44 = arith.constant 0 : index
    %c0_45 = arith.constant 0 : index
    %57 = vector.load %arg11[%c0_43, %c0_44, %c0_45] : memref<1x8x128xf32, #tpu.memory_space<vmem>>, vector<1x8x128xf32>
    tpu.vector_store %arg11[%c0_43, %c0_44, %c0_45], %56 {strides = array<i32>} : memref<1x8x128xf32, #tpu.memory_space<vmem>>, vector<1x8x128xf32>,
    return
  }
  func.func @transform_0(%arg0: i32) -> (i32, i32, i32) {
    %c0_i32 = arith.constant 0 : i32
    %c0_i32_0 = arith.constant 0 : i32
    %c0_i32_1 = arith.constant 0 : i32
    return %arg0, %c0_i32, %c0_i32_0 : i32, i32, i32
  }
  func.func @transform_1(%arg0: i32) -> (i32, i32) {
    %c0_i32 = arith.constant 0 : i32
    %c0_i32_0 = arith.constant 0 : i32
    %c0_i32_1 = arith.constant 0 : i32
    return %c0_i32, %c0_i32_0 : i32, i32
  }
  func.func @transform_2(%arg0: i32) -> (i32, i32) {
    %c0_i32 = arith.constant 0 : i32
    %c0_i32_0 = arith.constant 0 : i32
    %c0_i32_1 = arith.constant 0 : i32
    return %c0_i32, %c0_i32_0 : i32, i32
  }
  func.func @transform_3(%arg0: i32) -> (i32, i32) {
    %c0_i32 = arith.constant 0 : i32
    %c0_i32_0 = arith.constant 0 : i32
    %c0_i32_1 = arith.constant 0 : i32
    return %c0_i32, %c0_i32_0 : i32, i32
  }
  func.func @transform_4(%arg0: i32) -> (i32, i32) {
    %c0_i32 = arith.constant 0 : i32
    %c0_i32_0 = arith.constant 0 : i32
    %c0_i32_1 = arith.constant 0 : i32
    return %c0_i32, %c0_i32_0 : i32, i32
  }
  func.func @transform_5(%arg0: i32) -> (i32, i32) {
    %c0_i32 = arith.constant 0 : i32
    %c0_i32_0 = arith.constant 0 : i32
    %c0_i32_1 = arith.constant 0 : i32
    return %c0_i32, %c0_i32_0 : i32, i32
  }
  func.func @transform_6(%arg0: i32) -> (i32, i32) {
    %c0_i32 = arith.constant 0 : i32
    %c0_i32_0 = arith.constant 0 : i32
    %c0_i32_1 = arith.constant 0 : i32
    return %c0_i32, %c0_i32_0 : i32, i32
  }
  func.func @transform_7(%arg0: i32) -> (i32, i32) {
    %c0_i32 = arith.constant 0 : i32
    %c0_i32_0 = arith.constant 0 : i32
    %c0_i32_1 = arith.constant 0 : i32
    return %c0_i32, %c0_i32_0 : i32, i32
  }
  func.func @transform_8(%arg0: i32) -> (i32, i32) {
    %c0_i32 = arith.constant 0 : i32
    %c0_i32_0 = arith.constant 0 : i32
    %c0_i32_1 = arith.constant 0 : i32
    return %c0_i32, %c0_i32_0 : i32, i32
  }
  func.func @transform_9(%arg0: i32) -> (i32, i32) {
    %c0_i32 = arith.constant 0 : i32
    %c0_i32_0 = arith.constant 0 : i32
    %c0_i32_1 = arith.constant 0 : i32
    return %c0_i32, %c0_i32_0 : i32, i32
  }
  func.func @transform_10(%arg0: i32) -> (i32, i32, i32) {
    %c0_i32 = arith.constant 0 : i32
    %c0_i32_0 = arith.constant 0 : i32
    %c0_i32_1 = arith.constant 0 : i32
    return %arg0, %c0_i32, %c0_i32_0 : i32, i32, i32
  }
}

</mosaic_0001>

<bundles_post_ra>
// kernel: tpu_custom_call.1
= control target key start
LH: loop header
LB: loop body
LE: loop exit
PB: predicated region body
PF: predicated region fallthrough
CT: control target
= control target key end

     0   :  { %15 = vsyncpa [#allocation3], 0  ;;  %s2767_s0 = inlined_call_operand.vmem [shape: f32[2,16,64], index: 0, kind: input, shape index: {}]   ;;  %s2768_s1 = inlined_call_operand.vmem [shape: f32[24,16], index: 1, kind: input, shape index: {}]   ;;  %s2769_s2 = inlined_call_operand.vmem [shape: f32[24,8], index: 2, kind: input, shape index: {}]   ;;  %s2770_s3 = inlined_call_operand.vmem [shape: f32[24,8], index: 3, kind: input, shape index: {}]   ;;  %s2771_s4 = inlined_call_operand.vmem [shape: f32[192,64], index: 4, kind: input, shape index: {}]   ;;  %s2772_s5 = inlined_call_operand.hbm [shape: f32[192,128], index: 5, kind: input, shape index: {}]   ;;  %s2773_s6 = inlined_call_operand.vmem [shape: f32[384,128], index: 6, kind: input, shape index: {}]   ;;  %s2774_s7 = inlined_call_operand.vmem [shape: f32[1,64], index: 7, kind: input, shape index: {}]   ;;  %s2775_s8 = inlined_call_operand.vmem [shape: f32[1,128], index: 8, kind: input, shape index: {}]   ;;  %s2776_s9 = inlined_call_operand.vmem [shape: f32[1,128], index: 9, kind: input, shape index: {}]   ;;  %s2777_s10 = inlined_call_operand.hbm [shape: f32[2,8,128], index: 10, kind: output, shape index: {}]  }
   0x1   :  { %16 = vsyncpa [#allocation4], 0 }
   0x2   :  { %18 = vsyncpa [#allocation4 + $0x1], 0  ;;  %s2278_s13 = smov 0   ;;  %s2280_s14 = smov 0  }
   0x3   :  { %s2282_s15 = smov 0   ;;  %s2284_s16 = smov 0  }
   0x4 LB: > { %s2299_s17 = sadd.s32 4294967295, %s2214_s16   ;;  %s1514_s18 = sadd.s32 4294967294, %s2214_s16   ;;  %s2214_s16 = sphi %s2284_s16, %s2793_s16   ;;  %s2210_s15 = sphi %s2282_s15, %s2792_s15   ;;  %s2206_s14 = sphi %s2280_s14, %s2791_s14   ;;  %s2202_s13 = sphi %s2278_s13, %s2790_s13  }
   0x5   : > { %s2303_s19 = sadd.s32 1, %s2214_s16   ;;  %s246_s20 = sadd.s32 1, %s2210_s15 }
   0x6   : > { %s243_s21 = ssub.s32 %s2214_s16, %s2303_s19  ;;  %p256_p0 = scmp.ne.s32.totalorder %s2210_s15, %s2206_s14 }
   0x7   : > { %p244_p1 = scmp.eq.s32.totalorder %s243_s21, 0  ;;  %p257_p2 = scmp.eq.s32.totalorder %s2299_s17, 1 }
   0x8   : > { %p262_p3 = scmp.ne.s32.totalorder %s2206_s14, %s2202_s13  ;;  %p263_p4 = scmp.eq.s32.totalorder %s1514_s18, 1 }
   0x9   : > { %s2314_s22 = scalar_select %p244_p1, %s2210_s15, %s246_s20  }
   0xa   : > { %p2316_p5 = por %p257_p2, %p256_p0  ;;  %p2320_p6 = por %p263_p4, %p262_p3 }
   0xb   : > { %p1515_p7 = scmp.ge.s32.totalorder %s2214_s16, 1  ;;  %p270_p8 = scmp.lt.s32.totalorder %s2214_s16, 3 }
   0xc   : > { %s2781_s23 = scalar_select %p2316_p5, 1, 0 }
   0xd   : > { %s2782_s24 = scalar_select %p2320_p6, 1, 0 }
   0xe   : > { %p2778_p9 = scmp.eq.s32.totalorder %s2299_s17, 0  ;;  %p2327_p10 = pnand %p1515_p7, %p270_p8 }
   0xf   : > { %s2216_s26 = smov [#allocation2]   ;;  %s2120_s11 = scalar_lea.hbm %s2772_s5, 3072 }
  0x10   : > { %s2783_s25 = scalar_select %p2327_p10, 1, 0 }
  0x11   : > { %s294_s27 = sshll.u32 %s2216_s26, 4  ;;  %p2071_p11 = pneg %p2327_p10  ;;  %s295_s27 = int_to_ptr.vmem [resolvable:$true] %s294_s27 }
  0x12   : > { %p2121_p13 = scmp.ne.s32.totalorder %s2772_s5, %s2120_s11  ;;  %p2127_p3 = scmp.lt.u32.totalorder %s2120_s11, %s2772_s5 }
  0x13   : > { %p2335_p12 = pnand %p2778_p9, %p2071_p11 }
  0x15   : > { %p2122_p0 = pneg %p2335_p12 }
  0x17   : > { %p2123_p1 = pnand %p2122_p0, %p2121_p13 }
  0x19   : > { %p2124_p2 = pneg %p2123_p1 }
  0x1b   : > { %p2129_p4 = pnand %p2127_p3, %p2124_p2 }
  0x1d   : > { %2132 = shalt.err (!%p2129_p4)
}
  0x1e   : > { %s2133_s26 = scalar_lea.vmem %s295_s27, 3072  ;;  %p2141_p9 = scmp.lt.s32.totalorder %s295_s27, %s295_s27 }
  0x1f   : > { %p2134_p7 = scmp.ne.s32.totalorder %s295_s27, %s2133_s26  ;;  %p2142_p6 = scmp.lt.s32.totalorder %s2133_s26, %s2133_s26 }
  0x21   : > { %p2136_p8 = pnand %p2134_p7, %p2122_p0  ;;  %p2143_p5 = por %p2142_p6, %p2141_p9 }
  0x23   : > { %p2137_p11 = pneg %p2136_p8 }
  0x25   : > { %p2144_p10 = pnand %p2143_p5, %p2137_p11 }
  0x27   : > { %2147 = shalt.err (!%p2144_p10)
}
  0x28   : > { %s2217_s29 = smov 128   ;;  %s2218_s30 = smov 8  }
  0x29   : > { %2074 = dma.hbm_to_vmem [thread:$0]  (!%p2335_p12), %s2772_s5, 3072, %s295_s27, [#allocation3], %s2217_s29, %s2217_s29, %s2218_s30  }
  0x2a   : > { %p2785_p13 = scmp.ne.s32.totalorder %s2783_s25, 0 }
  0x2b   : > { %p2786_p1 = scmp.eq.s32.totalorder (!%p2785_p13), %s2299_s17, 0 }
  0x2c   : > { %330 = sbr.rel (%p2785_p13) target bundleno = 1448 (0x5a8), region = 60 }
  0x33   : > { %2193 = dma.done.wait (%p2786_p1), [#allocation3], 3072   ;;  %p2787_p0 = pmov %p2786_p1 }
  0x34   : > { %p368_p5 = scmp.lt.s32.totalorder %s2299_s17, 1  ;;  %v2219_v0 = vmov 0.0|0.0   ;;  %vm2220_vm0 = vmmov 0   ;;  %v2221_v1 = vmov 0.0   ;;  %v476_v5 = vld [vmem:[%s2771_s4 + $0x40] sm:$0xff]  ;;  %v477_v6 = vld [vmem:[%s2771_s4 + $0x48] sm:$0xff] }
  0x35   : > { %2195 = vsyncadd (%p2787_p0), [#allocation3], 4294964224  ;;  %1918 = vmatprep.subr.bf16.mxu0 %v2219_v0  ;;  %1668 = vmatprep.mubr.msk.f32.mxu0 %vm2220_vm0, %v2221_v1  ;;  %v375_v7 = vld [vmem:[%s2768_s1] sm:$0xff]  ;;  %vm378_vm1 = vcmask 130048   ;;  %v1922_v8 = vpack.c.bf16 %v477_v6, %v476_v5  ;;  %v478_v9 = vld [vmem:[%s2771_s4 + $0x50] sm:$0xff]  ;;  %vm484_vm2 = vcmask 523264  }
  0x36   : > { %s369_s27 = scalar_select %p368_p5, %s2299_s17, 1  ;;  %1945 = vmatprep.subr.bf16.mxu1 %v2219_v0  ;;  %1731 = vmatprep.mubr.msk.f32.mxu1 %vm2220_vm0, %v2221_v1  ;;  %v479_v10 = vld [vmem:[%s2771_s4 + $0x58] sm:$0xff]  ;;  %v376_v11 = vld [vmem:[%s2768_s1 + $0x8] sm:$0xff]  ;;  %v480_v13 = vld [vmem:[%s2771_s4 + $0x60] sm:$0xff]  ;;  %vm725_vm3 = vcmask 64512  }
  0x37   : > { %v1925_v12 = vpack.c.bf16 %v479_v10, %v478_v9  ;;  %v481_v14 = vld [vmem:[%s2771_s4 + $0x68] sm:$0xff]  ;;  %v377_v15 = vld [vmem:[%s2768_s1 + $0x10] sm:$0xff]  ;;  %v483_v18 = vld [vmem:[%s2771_s4 + $0x78] sm:$0xff]  ;;  %s365_s26 = sand.u32 1, %s2206_s14   ;;  %s1542_s18 = sshll.u32 %s2299_s17, 7 }
  0x38   : > { %s1545_s25 = sshll.u32 %s369_s27, 4  ;;  %v1928_v16 = vpack.c.bf16 %v481_v14, %v480_v13  ;;  %v482_v17 = vld [vmem:[%s2771_s4 + $0x70] sm:$0xff]  ;;  %v631_v20 = vld [vmem:[%s2771_s4 + $0x80] sm:$0xff]  ;;  %v632_v21 = vld [vmem:[%s2771_s4 + $0x88] sm:$0xff]  ;;  %s1520_s29 = sshll.u32 %s365_s26, 3 }
  0x39   : > { %s372_s20 = scalar_lea.vmem %s2767_s0, %s1545_s25  ;;  %v1931_v19 = vpack.c.bf16 %v483_v18, %v482_v17  ;;  %v1946_v22 = vpack.c.bf16 %v632_v21, %v631_v20  ;;  %v633_v23 = vld [vmem:[%s2771_s4 + $0x90] sm:$0xff]  ;;  %v634_v24 = vld [vmem:[%s2771_s4 + $0x98] sm:$0xff]  ;;  %v635_v26 = vld [vmem:[%s2771_s4 + $0xa0] sm:$0xff]  ;;  %s367_s27 = scalar_lea.vmem [#allocation5], %s1520_s29 }
  0x3a   : > { %v373_v2 = vld [vmem:[%s372_s20] sm:$0xff]  ;;  %v374_v3 = vld [vmem:[%s372_s20 + $0x8] sm:$0xff]  ;;  %v1949_v25 = vpack.c.bf16 %v634_v24, %v633_v23  ;;  %v637_v29 = vld [vmem:[%s2771_s4 + $0xb0] sm:$0xff]  ;;  %s1443_s25 = sshll.u32 %s367_s27, 4  ;;  %s2725_s20 = scalar_lea.hbm %s2777_s10, %s1542_s18  ;;  %s2727_s25 = int_to_ptr.vmem [resolvable:$true] %s1443_s25 }
  0x3b   : > { %v1919_v4 = vpack.c.bf16 %v374_v3, %v373_v2  ;;  %1947 = vmatpush3.bf16.msra.mxu1 %v1946_v22  ;;  %v636_v27 = vld [vmem:[%s2771_s4 + $0xa8] sm:$0xff]  ;;  %v638_v30 = vld [vmem:[%s2771_s4 + $0xb8] sm:$0xff]  ;;  %v468_v32 = vld [vmem:[%s2771_s4] sm:$0xff]  ;;  %s1430_s21 = scalar_lea.sflag [#allocation4], %s365_s26  ;;  %s2148_s30 = scalar_lea.vmem %s2727_s25, 128 }
  0x3c   : > { %1948 = vmatprep.subr.bf16.mxu1 %v2219_v0  ;;  %v1952_v28 = vpack.c.bf16 %v636_v27, %v635_v26  ;;  %v1955_v31 = vpack.c.bf16 %v638_v30, %v637_v29  ;;  %v469_v33 = vld [vmem:[%s2771_s4 + $0x8] sm:$0xff]  ;;  %v470_v37 = vld [vmem:[%s2771_s4 + $0x10] sm:$0xff]  ;;  %v471_v38 = vld [vmem:[%s2771_s4 + $0x18] sm:$0xff]  ;;  %p2149_p6 = scmp.ne.s32.totalorder %s2727_s25, %s2148_s30  ;;  %p2788_p9 = scmp.ne.s32.totalorder %s2781_s23, 0 }
  0x3d   : > { %1920 = vmatpush3.bf16.msra.mxu0 %v1919_v4  ;;  %v1934_v36 = vpack.c.bf16 %v469_v33, %v468_v32  ;;  %v1937_v41 = vpack.c.bf16 %v471_v38, %v470_v37  ;;  %v472_v42 = vld [vmem:[%s2771_s4 + $0x20] sm:$0xff]  ;;  %v473_v43 = vld [vmem:[%s2771_s4 + $0x28] sm:$0xff]  ;;  %v474_v47 = vld [vmem:[%s2771_s4 + $0x30] sm:$0xff]  ;;  %s2222_s17 = smov [#allocation5]  }
  0x3e   : > { %1921 = vmatprep.subr.bf16.mxu0 %v2219_v0  ;;  %v1940_v46 = vpack.c.bf16 %v473_v43, %v472_v42  ;;  %v475_v48 = vld [vmem:[%s2771_s4 + $0x38] sm:$0xff]  ;;  %v815_v50 = vld [vmem:[#allocation2] sm:$0xff]  ;;  %v816_v51 = vld [vmem:[#allocation2 + $0x8] sm:$0xff]  ;;  %p2150_p10 = pnand %p2149_p6, %p2788_p9  ;;  %s2152_s29 = sshll.u32 %s2222_s17, 4  ;;  %s2153_s29 = int_to_ptr.vmem [resolvable:$false] %s2152_s29 }
  0x3f   : > { %1950 = vmatpush3.bf16.msra.mxu1 %v1949_v25  ;;  %v1943_v49 = vpack.c.bf16 %v475_v48, %v474_v47  ;;  %v1970_v52 = vpack.c.bf16 %v816_v51, %v815_v50  ;;  %v817_v53 = vld [vmem:[#allocation2 + $0x10] sm:$0xff]  ;;  %v818_v54 = vld [vmem:[#allocation2 + $0x18] sm:$0xff]  ;;  %v819_v56 = vld [vmem:[#allocation2 + $0x20] sm:$0xff]  ;;  %s2154_s12 = scalar_lea.vmem %s2153_s29, 256  ;;  %p2155_p2 = scmp.lt.s32.totalorder %s2727_s25, %s2153_s29 }
  0x40   : > { %1669 = vmatmul.mubr.msk.f32.vlgmr.msra.gmra.mrb[0].mxu0 %vm378_vm1, %v375_v7  ;;  %1951 = vmatprep.subr.bf16.mxu1 %v2219_v0  ;;  %v1973_v55 = vpack.c.bf16 %v818_v54, %v817_v53  ;;  %v820_v57 = vld [vmem:[#allocation2 + $0x28] sm:$0xff]  ;;  %v821_v59 = vld [vmem:[#allocation2 + $0x30] sm:$0xff]  ;;  %v822_v60 = vld [vmem:[#allocation2 + $0x38] sm:$0xff]  ;;  %p2151_p12 = pneg %p2150_p10  ;;  %p2156_p3 = scmp.lt.s32.totalorder %s2154_s12, %s2148_s30 }
  0x41   : > { %1671 = vmatprep.mubr.msk.f32.mxu0 %vm2220_vm0, %v2221_v1  ;;  %1923 = vmatpush3.bf16.msra.mxu0 %v1922_v8  ;;  %v1976_v58 = vpack.c.bf16 %v820_v57, %v819_v56  ;;  %v1979_v61 = vpack.c.bf16 %v822_v60, %v821_v59  ;;  %v1529_v7 = vld [vmem:[%s2774_s7] ss:$0 sm:$0xff]  ;;  %v824_v10 = vld [vmem:[#allocation2 + $0x48] sm:$0xff]  ;;  %v724_v21 = vld [vmem:[%s2769_s2 + $0x10] sm:$0xff] }
  0x42   : > { %1924 = vmatprep.subr.bf16.mxu0 %v2219_v0  ;;  %v823_v9 = vld [vmem:[#allocation2 + $0x40] sm:$0xff]  ;;  %v723_v17 = vld [vmem:[%s2769_s2 + $0x8] sm:$0xff]  ;;  %v829_v23 = vld [vmem:[#allocation2 + $0x70] sm:$0xff]  ;;  %p2157_p4 = por %p2156_p3, %p2155_p2 }
  0x43   : > { %1953 = vmatpush3.bf16.msra.mxu1 %v1952_v28  ;;  %v722_v13 = vld [vmem:[%s2769_s2] sm:$0xff]  ;;  %v1958_v14 = vpack.c.bf16 %v824_v10, %v823_v9  ;;  %v828_v20 = vld [vmem:[#allocation2 + $0x68] sm:$0xff]  ;;  %v830_v24 = vld [vmem:[#allocation2 + $0x78] sm:$0xff] }
  0x44   : > { %1672 = vmatmul.mubr.msk.f32.gmra.mrb[2].mxu0 %vm378_vm1, %v376_v11  ;;  %1954 = vmatprep.subr.bf16.mxu1 %v2219_v0  ;;  %v1967_v25 = vpack.c.bf16 %v830_v24, %v829_v23  ;;  %v977_v26 = vld [vmem:[#allocation2 + $0x80] sm:$0xff]  ;;  %v978_v27 = vld [vmem:[#allocation2 + $0x88] sm:$0xff]  ;;  %v980_v32 = vld [vmem:[#allocation2 + $0x98] sm:$0xff]  ;;  %p2158_p7 = pnand %p2157_p4, %p2151_p12 }
  0x45   : > { %1674 = vmatprep.mubr.msk.f32.mxu0 %vm2220_vm0, %v2221_v1  ;;  %1926 = vmatpush3.bf16.msra.mxu0 %v1925_v12  ;;  %v1982_v30 = vpack.c.bf16 %v978_v27, %v977_v26  ;;  %v982_v37 = vld [vmem:[#allocation2 + $0xa8] sm:$0xff]  ;;  %v984_v42 = vld [vmem:[#allocation2 + $0xb8] sm:$0xff]  ;;  %v1162_v47 = vld [vmem:[%s2773_s6 + $0x10] sm:$0xff] }
  0x46   : > { %1927 = vmatprep.subr.bf16.mxu0 %v2219_v0  ;;  %v1163_v48 = vld [vmem:[%s2773_s6 + $0x18] sm:$0xff]  ;;  %v1164_v50 = vld [vmem:[%s2773_s6 + $0x20] sm:$0xff]  ;;  %v1165_v51 = vld [vmem:[%s2773_s6 + $0x28] sm:$0xff] }
  0x47   : > { %1956 = vmatpush3.bf16.msra.mxu1 %v1955_v31  ;;  %v979_v31 = vld [vmem:[#allocation2 + $0x90] sm:$0xff]  ;;  %v1167_v54 = vld [vmem:[%s2773_s6 + $0x38] sm:$0xff]  ;;  %v1168_v56 = vld [vmem:[%s2773_s6 + $0x40] sm:$0xff] }
  0x48   : > { %1675 = vmatmul.mubr.msk.f32.gmra.mrb[4].mxu0 %vm378_vm1, %v377_v15  ;;  %1969 = vmatprep.subr.bf16.mxu1 %v2219_v0  ;;  %v825_v15 = vld [vmem:[#allocation2 + $0x50] sm:$0xff]  ;;  %v1169_v57 = vld [vmem:[%s2773_s6 + $0x48] sm:$0xff]  ;;  %v1171_v60 = vld [vmem:[%s2773_s6 + $0x58] sm:$0xff] }
  0x49   : > { %1929 = vmatpush3.bf16.msra.mxu0 %v1928_v16  ;;  %1693 = vmatprep.mubr.msk.f32.mxu0 %vm2220_vm0, %v2221_v1  ;;  %v826_v16 = vld [vmem:[#allocation2 + $0x58] sm:$0xff]  ;;  %v1166_v53 = vld [vmem:[%s2773_s6 + $0x30] sm:$0xff]  ;;  %v1069_v23 = vld [vmem:[%s2770_s3 + $0x8] sm:$0xff] }
  0x4a   : > { %1930 = vmatprep.subr.bf16.mxu0 %v2219_v0  ;;  %v1961_v18 = vpack.c.bf16 %v826_v16, %v825_v15  ;;  %v1170_v59 = vld [vmem:[%s2773_s6 + $0x50] sm:$0xff]  ;;  %v1176_v15 = vld [vmem:[%s2773_s6 + $0x80] sm:$0xff]  ;;  %v1177_v16 = vld [vmem:[%s2773_s6 + $0x88] sm:$0xff] }
  0x4b   : > { %v1181_v26 = vld [vmem:[%s2773_s6 + $0xa8] sm:$0xff]  ;;  %v1070_v27 = vld [vmem:[%s2770_s3 + $0x10] sm:$0xff] }
  0x4d   : > { %1932 = vmatpush3.bf16.msra.mxu0 %v1931_v19  ;;  %v827_v19 = vld [vmem:[#allocation2 + $0x60] sm:$0xff] }
  0x4e   : > { %1933 = vmatprep.subr.bf16.mxu0 %v2219_v0  ;;  %v1964_v22 = vpack.c.bf16 %v828_v20, %v827_v19  ;;  %v1068_v19 = vld [vmem:[%s2770_s3] sm:$0xff]  ;;  %v1994_v20 = vpack.c.bf16 %v1177_v16, %v1176_v15 }
 0x113   : > { %v454_v34 = vpop.f32.mrb[0].mxu0 }
 0x114   : > { %v1670_v35 = vpop.f32.mrb[1].mxu0 }
 0x115   : > { %v1985_v35 = vpack.c.bf16 %v980_v32, %v979_v31  ;;  %v1184_v32 = vld [vmem:[%s2773_s6 + $0xc0] sm:$0xff] }
 0x117   : > { %v459_v39 = vpop.f32.mrb[2].mxu0 }
 0x118   : > { %v1673_v40 = vpop.f32.mrb[3].mxu0  ;;  %1694 = vmatmul.mubr.msk.f32.vlgmr.msra.gmra.mrb[6].mxu0 %vm484_vm2, %v459_v39 }
 0x119   : > { %1935 = vmatpush3.bf16.msra.mxu0 %v1934_v36  ;;  %1712 = vmatprep.mubr.msk.f32.mxu0 %vm2220_vm0, %v2221_v1  ;;  %v981_v36 = vld [vmem:[#allocation2 + $0xa0] sm:$0xff] }
 0x11a   : > { %1936 = vmatprep.subr.bf16.mxu0 %v2219_v0  ;;  %v1988_v40 = vpack.c.bf16 %v982_v37, %v981_v36  ;;  %v1187_v36 = vld [vmem:[%s2773_s6 + $0xd8] sm:$0xff] }
 0x11b   : > { %v464_v44 = vpop.f32.mrb[4].mxu0 }
 0x11c   : > { %v1676_v45 = vpop.f32.mrb[5].mxu0  ;;  %1732 = vmatmul.mubr.msk.f32.vlgmr.msra.gmra.mrb[0].mxu1 %vm484_vm2, %v464_v44  ;;  %v1160_v44 = vld [vmem:[%s2773_s6] sm:$0xff] }
 0x11d   : > { %1938 = vmatpush3.bf16.msra.mxu0 %v1937_v41  ;;  %1780 = vmatprep.mubr.msk.f32.mxu1 %vm2220_vm0, %v2221_v1  ;;  %v983_v41 = vld [vmem:[#allocation2 + $0xb0] sm:$0xff]  ;;  %v1161_v45 = vld [vmem:[%s2773_s6 + $0x8] sm:$0xff] }
 0x11e   : > { %1939 = vmatprep.subr.bf16.mxu0 %v2219_v0  ;;  %1971 = vmatpush3.bf16.msra.mxu1 %v1970_v52  ;;  %v1991_v43 = vpack.c.bf16 %v984_v42, %v983_v41  ;;  %v2024_v52 = vpack.c.bf16 %v1165_v51, %v1164_v50  ;;  %v1190_v41 = vld [vmem:[%s2773_s6 + $0xf0] sm:$0xff]  ;;  %v1191_v42 = vld [vmem:[%s2773_s6 + $0xf8] sm:$0xff] }
 0x11f   : > { %1972 = vmatprep.subr.bf16.mxu1 %v2219_v0  ;;  %v1335_v50 = vld [vmem:[%s2773_s6 + $0x118] sm:$0xff] }
 0x121   : > { %1941 = vmatpush3.bf16.msra.mxu0 %v1940_v46  ;;  %v2018_v46 = vpack.c.bf16 %v1161_v45, %v1160_v44  ;;  %v1332_v44 = vld [vmem:[%s2773_s6 + $0x100] sm:$0xff]  ;;  %v1333_v45 = vld [vmem:[%s2773_s6 + $0x108] sm:$0xff] }
 0x122   : > { %1942 = vmatprep.subr.bf16.mxu0 %v2219_v0  ;;  %1974 = vmatpush3.bf16.msra.mxu1 %v1973_v55  ;;  %v2027_v55 = vpack.c.bf16 %v1167_v54, %v1166_v53  ;;  %v1336_v54 = vld [vmem:[%s2773_s6 + $0x120] sm:$0xff] }
 0x123   : > { %1975 = vmatprep.subr.bf16.mxu1 %v2219_v0 }
 0x125   : > { %1944 = vmatpush3.bf16.msra.mxu0 %v1943_v49  ;;  %v2021_v49 = vpack.c.bf16 %v1163_v48, %v1162_v47  ;;  %v2042_v48 = vpack.c.bf16 %v1333_v45, %v1332_v44 }
 0x126   : > { %1734 = vmatprep.subr.mxu0 %v2221_v1  ;;  %1977 = vmatpush3.bf16.msra.mxu1 %v1976_v58  ;;  %v2030_v58 = vpack.c.bf16 %v1169_v57, %v1168_v56 }
 0x127   : > { %1978 = vmatprep.subr.bf16.mxu1 %v2219_v0 }
 0x128   : > { %1713 = vmatmul.mubr.msk.f32.vlgmr.msra.gmra.mrb[8].mxu0 %vm484_vm2, %v454_v34 }
 0x129   : > { %1736 = vmatprep.mubr.msk.f32.mxu0 %vm2220_vm0, %v2221_v1 }
 0x12a   : > { %1980 = vmatpush3.bf16.msra.mxu1 %v1979_v61  ;;  %v2033_v61 = vpack.c.bf16 %v1171_v60, %v1170_v59  ;;  %v1339_v59 = vld [vmem:[%s2773_s6 + $0x138] sm:$0xff] }
 0x12b   : > { %1802 = vmatprep.subr.mxu1 %v2221_v1 }
 0x1eb   : > { %v554_v62 = vpop.f32.mrb[6].mxu0 }
 0x1ec   : > { %v1695_v63 = vpop.f32.mrb[7].mxu0 }
 0x1ed   : > { %v1173_v63 = vld [vmem:[%s2773_s6 + $0x68] sm:$0xff] }
 0x1ef   : > { %v708_v2 = vpop.f32.mrb[0].mxu1 }
 0x1f0   : > { %v1733_v3 = vpop.f32.mrb[1].mxu1 }
 0x1f1   : > { %v1174_v3 = vld [vmem:[%s2773_s6 + $0x70] sm:$0xff] }
 0x1fb   : > { %v627_v4 = vpop.f32.mrb[8].mxu0 }
 0x1fc   : > { %v628_v5 = vadd.f32 %v627_v4, %v554_v62  ;;  %v1714_v6 = vpop.f32.mrb[9].mxu0  ;;  %v1172_v62 = vld [vmem:[%s2773_s6 + $0x60] sm:$0xff]  ;;  %v1175_v4 = vld [vmem:[%s2773_s6 + $0x78] sm:$0xff] }
 0x1fe   : > { %v712_v8 = vadd.f32 %v708_v2, %v628_v5  ;;  %v2036_v2 = vpack.c.bf16 %v1173_v63, %v1172_v62  ;;  %v2039_v5 = vpack.c.bf16 %v1175_v4, %v1174_v3  ;;  %v1341_v62 = vld [vmem:[%s2773_s6 + $0x148] sm:$0xff]  ;;  %v1343_v3 = vld [vmem:[%s2773_s6 + $0x158] sm:$0xff] }
 0x200   : > { %v720_v11 = vadd.f32 %v1529_v7, %v712_v8 }
 0x202   : > { %v721_v12 = vmax.f32 %v720_v11, 0.0 }
 0x204   : > { %1735 = vmatpush3.msra.mxu0 %v721_v12  ;;  %v1536_v12 = vld [vmem:[%s2775_s8] ss:$0 sm:$0xff] }
 0x205   : > { %1737 = vmatmul.mubr.msk.f32.vlgmr.msra.gmra.mrb[10].mxu0 %vm725_vm3, %v722_v13  ;;  %1957 = vmatprep.subr.bf16.mxu0 %v2219_v0 }
 0x206   : > { %1739 = vmatprep.mubr.msk.f32.mxu0 %vm2220_vm0, %v2221_v1  ;;  %1959 = vmatpush3.bf16.msra.mxu0 %v1958_v14 }
 0x207   : > { %1960 = vmatprep.subr.bf16.mxu0 %v2219_v0 }
 0x209   : > { %1740 = vmatmul.mubr.msk.f32.gmra.mrb[12].mxu0 %vm725_vm3, %v723_v17 }
 0x20a   : > { %1742 = vmatprep.mubr.msk.f32.mxu0 %vm2220_vm0, %v2221_v1  ;;  %1962 = vmatpush3.bf16.msra.mxu0 %v1961_v18 }
 0x20b   : > { %1963 = vmatprep.subr.bf16.mxu0 %v2219_v0 }
 0x20d   : > { %1743 = vmatmul.mubr.msk.f32.gmra.mrb[14].mxu0 %vm725_vm3, %v724_v21  ;;  %v1178_v21 = vld [vmem:[%s2773_s6 + $0x90] sm:$0xff] }
 0x20e   : > { %1965 = vmatpush3.bf16.msra.mxu0 %v1964_v22  ;;  %1761 = vmatprep.mubr.msk.f32.mxu0 %vm2220_vm0, %v2221_v1  ;;  %v1179_v22 = vld [vmem:[%s2773_s6 + $0x98] sm:$0xff] }
 0x20f   : > { %1966 = vmatprep.subr.bf16.mxu0 %v2219_v0  ;;  %v1997_v24 = vpack.c.bf16 %v1179_v22, %v1178_v21 }
 0x212   : > { %1968 = vmatpush3.bf16.msra.mxu0 %v1967_v25  ;;  %v1180_v25 = vld [vmem:[%s2773_s6 + $0xa0] sm:$0xff] }
 0x213   : > { %1981 = vmatprep.subr.bf16.mxu0 %v2219_v0 }
 0x2d8   : > { %v801_v28 = vpop.f32.mrb[10].mxu0 }
 0x2d9   : > { %v1738_v29 = vpop.f32.mrb[11].mxu0  ;;  %1781 = vmatmul.mubr.msk.f32.vlgmr.msra.gmra.mrb[2].mxu1 %vm484_vm2, %v801_v28  ;;  %v2000_v28 = vpack.c.bf16 %v1181_v26, %v1180_v25 }
 0x2da   : > { %1804 = vmatprep.mubr.msk.f32.mxu1 %vm2220_vm0, %v2221_v1  ;;  %v1182_v29 = vld [vmem:[%s2773_s6 + $0xb0] sm:$0xff] }
 0x2dc   : > { %v806_v33 = vpop.f32.mrb[12].mxu0 }
 0x2dd   : > { %v1741_v34 = vpop.f32.mrb[13].mxu0  ;;  %1762 = vmatmul.mubr.msk.f32.vlgmr.msra.gmra.mrb[16].mxu0 %vm484_vm2, %v806_v33  ;;  %v1185_v33 = vld [vmem:[%s2773_s6 + $0xc8] sm:$0xff] }
 0x2de   : > { %1983 = vmatpush3.bf16.msra.mxu0 %v1982_v30  ;;  %1799 = vmatprep.mubr.msk.f32.mxu0 %vm2220_vm0, %v2221_v1  ;;  %v1183_v30 = vld [vmem:[%s2773_s6 + $0xb8] sm:$0xff]  ;;  %v2006_v34 = vpack.c.bf16 %v1185_v33, %v1184_v32 }
 0x2df   : > { %1984 = vmatprep.subr.bf16.mxu0 %v2219_v0  ;;  %v2003_v31 = vpack.c.bf16 %v1183_v30, %v1182_v29 }
 0x2e0   : > { %v811_v38 = vpop.f32.mrb[14].mxu0 }
 0x2e1   : > { %v1744_v39 = vpop.f32.mrb[15].mxu0 }
 0x2e2   : > { %1986 = vmatpush3.bf16.msra.mxu0 %v1985_v35  ;;  %v1186_v35 = vld [vmem:[%s2773_s6 + $0xd0] sm:$0xff]  ;;  %v1189_v39 = vld [vmem:[%s2773_s6 + $0xe8] sm:$0xff] }
 0x2e3   : > { %1987 = vmatprep.subr.bf16.mxu0 %v2219_v0  ;;  %v2009_v37 = vpack.c.bf16 %v1187_v36, %v1186_v35 }
 0x2e6   : > { %1989 = vmatpush3.bf16.msra.mxu0 %v1988_v40 }
 0x2e7   : > { %1990 = vmatprep.subr.bf16.mxu0 %v2219_v0 }
 0x2ea   : > { %1992 = vmatpush3.bf16.msra.mxu0 %v1991_v43  ;;  %v2015_v43 = vpack.c.bf16 %v1191_v42, %v1190_v41 }
 0x2eb   : > { %2017 = vmatprep.subr.bf16.mxu0 %v2219_v0 }
 0x2ed   : > { %1800 = vmatmul.mubr.msk.f32.vlgmr.msra.gmra.mrb[18].mxu0 %vm484_vm2, %v811_v38  ;;  %v1188_v38 = vld [vmem:[%s2773_s6 + $0xe0] sm:$0xff] }
 0x2ee   : > { %1880 = vmatprep.mubr.msk.f32.mxu0 %vm2220_vm0, %v2221_v1  ;;  %2019 = vmatpush3.bf16.msra.mxu0 %v2018_v46  ;;  %v2012_v40 = vpack.c.bf16 %v1189_v39, %v1188_v38 }
 0x2ef   : > { %2020 = vmatprep.subr.bf16.mxu0 %v2219_v0 }
 0x2f2   : > { %2022 = vmatpush3.bf16.msra.mxu0 %v2021_v49  ;;  %v1334_v49 = vld [vmem:[%s2773_s6 + $0x110] sm:$0xff] }
 0x2f3   : > { %2023 = vmatprep.subr.bf16.mxu0 %v2219_v0  ;;  %v2045_v53 = vpack.c.bf16 %v1335_v50, %v1334_v49 }
 0x2f6   : > { %2025 = vmatpush3.bf16.msra.mxu0 %v2024_v52 }
 0x2f7   : > { %2026 = vmatprep.subr.bf16.mxu0 %v2219_v0 }
 0x2fa   : > { %2028 = vmatpush3.bf16.msra.mxu0 %v2027_v55  ;;  %v1337_v55 = vld [vmem:[%s2773_s6 + $0x128] sm:$0xff] }
 0x2fb   : > { %2029 = vmatprep.subr.bf16.mxu0 %v2219_v0 }
 0x2fe   : > { %2031 = vmatpush3.bf16.msra.mxu0 %v2030_v58  ;;  %v2048_v58 = vpack.c.bf16 %v1337_v55, %v1336_v54 }
 0x2ff   : > { %2032 = vmatprep.subr.bf16.mxu0 %v2219_v0 }
 0x302   : > { %2034 = vmatpush3.bf16.msra.mxu0 %v2033_v61  ;;  %v1340_v61 = vld [vmem:[%s2773_s6 + $0x140] sm:$0xff] }
 0x303   : > { %2035 = vmatprep.subr.bf16.mxu0 %v2219_v0  ;;  %v2054_v63 = vpack.c.bf16 %v1341_v62, %v1340_v61 }
 0x306   : > { %2037 = vmatpush3.bf16.msra.mxu0 %v2036_v2  ;;  %v1342_v2 = vld [vmem:[%s2773_s6 + $0x150] sm:$0xff] }
 0x307   : > { %2038 = vmatprep.subr.bf16.mxu0 %v2219_v0  ;;  %v2057_v4 = vpack.c.bf16 %v1343_v3, %v1342_v2 }
 0x30a   : > { %2040 = vmatpush3.bf16.msra.mxu0 %v2039_v5  ;;  %v1344_v5 = vld [vmem:[%s2773_s6 + $0x160] sm:$0xff] }
 0x3ac   : > { %v973_v6 = vpop.f32.mrb[2].mxu1 }
 0x3ad   : > { %v1782_v7 = vpop.f32.mrb[3].mxu1 }
 0x3b0   : > { %v900_v8 = vpop.f32.mrb[16].mxu0 }
 0x3b1   : > { %v974_v9 = vadd.f32 %v973_v6, %v900_v8  ;;  %v1763_v10 = vpop.f32.mrb[17].mxu0  ;;  %v1345_v6 = vld [vmem:[%s2773_s6 + $0x168] sm:$0xff]  ;;  %v1346_v8 = vld [vmem:[%s2773_s6 + $0x170] sm:$0xff] }
 0x3b2   : > { %v2060_v7 = vpack.c.bf16 %v1345_v6, %v1344_v5 }
 0x3c0   : > { %v1054_v11 = vpop.f32.mrb[18].mxu0 }
 0x3c1   : > { %v1058_v13 = vadd.f32 %v1054_v11, %v974_v9  ;;  %v1801_v14 = vpop.f32.mrb[19].mxu0  ;;  %v1347_v9 = vld [vmem:[%s2773_s6 + $0x178] sm:$0xff] }
 0x3c2   : > { %v2063_v10 = vpack.c.bf16 %v1347_v9, %v1346_v8 }
 0x3c3   : > { %v1066_v17 = vadd.f32 %v1536_v12, %v1058_v13 }
 0x3c5   : > { %v1067_v18 = vmax.f32 %v1066_v17, 0.0  ;;  %v1540_v17 = vld [vmem:[%s2776_s9] ss:$0 sm:$0xff] }
 0x3c7   : > { %1803 = vmatpush3.msra.mxu1 %v1067_v18 }
 0x3c8   : > { %1805 = vmatmul.mubr.msk.f32.vlgmr.msra.gmra.mrb[4].mxu1 %vm725_vm3, %v1068_v19  ;;  %1993 = vmatprep.subr.bf16.mxu1 %v2219_v0 }
 0x3c9   : > { %1807 = vmatprep.mubr.msk.f32.mxu1 %vm2220_vm0, %v2221_v1  ;;  %1995 = vmatpush3.bf16.msra.mxu1 %v1994_v20 }
 0x3ca   : > { %1996 = vmatprep.subr.bf16.mxu1 %v2219_v0 }
 0x3cc   : > { %1808 = vmatmul.mubr.msk.f32.gmra.mrb[6].mxu1 %vm725_vm3, %v1069_v23 }
 0x3cd   : > { %1810 = vmatprep.mubr.msk.f32.mxu1 %vm2220_vm0, %v2221_v1  ;;  %1998 = vmatpush3.bf16.msra.mxu1 %v1997_v24 }
 0x3ce   : > { %1999 = vmatprep.subr.bf16.mxu1 %v2219_v0 }
 0x3d0   : > { %1811 = vmatmul.mubr.msk.f32.gmra.mrb[8].mxu1 %vm725_vm3, %v1070_v27 }
 0x3d1   : > { %2001 = vmatpush3.bf16.msra.mxu1 %v2000_v28  ;;  %1845 = vmatprep.mubr.msk.f32.mxu1 %vm2220_vm0, %v2221_v1 }
 0x3d2   : > { %2002 = vmatprep.subr.bf16.mxu1 %v2219_v0 }
 0x3d5   : > { %2004 = vmatpush3.bf16.msra.mxu1 %v2003_v31 }
 0x3d6   : > { %2005 = vmatprep.subr.bf16.mxu1 %v2219_v0 }
 0x3d9   : > { %2007 = vmatpush3.bf16.msra.mxu1 %v2006_v34 }
 0x3da   : > { %2008 = vmatprep.subr.bf16.mxu1 %v2219_v0 }
 0x3dd   : > { %2010 = vmatpush3.bf16.msra.mxu1 %v2009_v37 }
 0x3de   : > { %2011 = vmatprep.subr.bf16.mxu1 %v2219_v0 }
 0x3e1   : > { %2013 = vmatpush3.bf16.msra.mxu1 %v2012_v40 }
 0x3e2   : > { %2014 = vmatprep.subr.bf16.mxu1 %v2219_v0 }
 0x3e5   : > { %2016 = vmatpush3.bf16.msra.mxu1 %v2015_v43 }
 0x3e6   : > { %2041 = vmatprep.subr.bf16.mxu1 %v2219_v0 }
 0x49b   : > { %v1146_v46 = vpop.f32.mrb[4].mxu1 }
 0x49c   : > { %v1806_v47 = vpop.f32.mrb[5].mxu1  ;;  %1881 = vmatmul.mubr.f32.vlgmr.msra.gmra.mrb[20].mxu0 %v1146_v46 }
 0x49f   : > { %v1151_v51 = vpop.f32.mrb[6].mxu1 }
 0x4a0   : > { %1846 = vmatmul.mubr.f32.vlgmr.msra.gmra.mrb[10].mxu1 %v1151_v51  ;;  %v1809_v52 = vpop.f32.mrb[7].mxu1 }
 0x4a1   : > { %2043 = vmatpush3.bf16.msra.mxu1 %v2042_v48  ;;  %1915 = vmatprep.mubr.msk.f32.mxu1 %vm2220_vm0, %v2221_v1  ;;  %v1338_v1 = vld [vmem:[%s2773_s6 + $0x130] sm:$0xff] }
 0x4a2   : > { %2044 = vmatprep.subr.bf16.mxu1 %v2219_v0  ;;  %v2051_v60 = vpack.c.bf16 %v1339_v59, %v1338_v1 }
 0x4a3   : > { %v1156_v56 = vpop.f32.mrb[8].mxu1 }
 0x4a4   : > { %v1812_v57 = vpop.f32.mrb[9].mxu1 }
 0x4a5   : > { %2046 = vmatpush3.bf16.msra.mxu1 %v2045_v53 }
 0x4a6   : > { %2047 = vmatprep.subr.bf16.mxu1 %v2219_v0 }
 0x4a9   : > { %2049 = vmatpush3.bf16.msra.mxu1 %v2048_v58 }
 0x4aa   : > { %2050 = vmatprep.subr.bf16.mxu1 %v2219_v0 }
 0x4ad   : > { %2052 = vmatpush3.bf16.msra.mxu1 %v2051_v60 }
 0x4ae   : > { %2053 = vmatprep.subr.bf16.mxu1 %v2219_v0 }
 0x4b1   : > { %2055 = vmatpush3.bf16.msra.mxu1 %v2054_v63 }
 0x4b2   : > { %2056 = vmatprep.subr.bf16.mxu1 %v2219_v0 }
 0x4b5   : > { %2058 = vmatpush3.bf16.msra.mxu1 %v2057_v4 }
 0x4b6   : > { %2059 = vmatprep.subr.bf16.mxu1 %v2219_v0 }
 0x4b9   : > { %2061 = vmatpush3.bf16.msra.mxu1 %v2060_v7 }
 0x4ba   : > { %2062 = vmatprep.subr.bf16.mxu1 %v2219_v0 }
 0x4bd   : > { %2064 = vmatpush3.bf16.msra.mxu1 %v2063_v10 }
 0x4c0   : > { %1916 = vmatmul.mubr.f32.vlgmr.msra.gmra.mrb[12].mxu1 %v1156_v56 }
 0x56f   : > { %v1328_v11 = vpop.f32.mrb[20].mxu0 }
 0x570   : > { %v1882_v12 = vpop.f32.mrb[21].mxu0 }
 0x573   : > { %v1258_v13 = vpop.f32.mrb[10].mxu1 }
 0x574   : > { %v1329_v14 = vadd.f32 %v1328_v11, %v1258_v13  ;;  %v1847_v15 = vpop.f32.mrb[11].mxu1 }
 0x593   : > { %v1414_v16 = vpop.f32.mrb[12].mxu1 }
 0x594   : > { %v1418_v18 = vadd.f32 %v1414_v16, %v1329_v14  ;;  %v1917_v19 = vpop.f32.mrb[13].mxu1 }
 0x596   : > { %v1426_v0 = vadd.f32 %v1540_v17, %v1418_v18 }
 0x598   : > { %v1427_v20 = vmax.f32 %v1426_v0, 0.0 }
 0x59a   : > { %1428 = vst [vmem:[%s367_s27] sm:$0xff] %v1427_v20 }
 0x59b   : > { %2161 = shalt.err (!%p2158_p7)
}
 0x59c   : > { %s2162_s26 = scalar_lea.hbm %s2725_s20, 128  ;;  %s2166_s28 = scalar_lea.hbm %s2777_s10, 256 }
 0x59d   : > { %p2163_p8 = scmp.ne.s32.totalorder %s2725_s20, %s2162_s26  ;;  %p2167_p1 = scmp.lt.u32.totalorder %s2725_s20, %s2777_s10 }
 0x59e   : > { %p2168_p0 = scmp.lt.u32.totalorder %s2166_s28, %s2162_s26  ;;  %p2170_p6 = scmp.lt.u32.totalorder %s2162_s26, %s2725_s20 }
 0x59f   : > { %p2164_p11 = pnand %p2163_p8, %p2788_p9 }
 0x5a0   : > { %p2169_p5 = por %p2168_p0, %p2167_p1 }
 0x5a1   : > { %p2165_p13 = pneg %p2164_p11 }
 0x5a2   : > { %p2171_p10 = por %p2170_p6, %p2169_p5 }
 0x5a4   : > { %p2172_p12 = pnand %p2171_p10, %p2165_p13 }
 0x5a6   : > { %2175 = shalt.err (!%p2172_p12)
}
 0x5a7   : > { %2069 = dma.vmem_to_hbm [thread:$0]  (%p2788_p9), %s2727_s25, 128, %s2725_s20, %s1430_s21  }
 0x5a8 PF: > { %p2081_p2 = scmp.ge.s32.totalorder %s2214_s16, 2  ;;  %s1455_s30 = sand.u32 1, %s2202_s13  }
 0x5a9   : > { %p2789_p3 = scmp.ne.s32.totalorder %s2782_s24, 0  ;;  %s1456_s29 = scalar_lea.sflag [#allocation4], %s1455_s30 }
 0x5ab   : > { %p2076_p4 = pnand %p2081_p2, %p2789_p3 }
 0x5ad   : > { %2197 = dma.done.wait (!%p2076_p4), %s1456_s29, 128  }
 0x5ae   : > { %2199 = vsyncadd (!%p2076_p4), %s1456_s29, 4294967168  ;;  %p21_p7 = scmp.ge.s32.totalorder %s2303_s19, 4   ;;  %s2790_s13 = smov %s2206_s14 }
 0x5af   : > { %s2791_s14 = smov %s2210_s15  ;;  %s2792_s15 = smov %s2314_s22 }
 0x5b0   : > { %s2793_s16 = smov %s2303_s19  ;;  %23 = sbr.rel (!%p21_p7) target bundleno = 4 (0x4), region = 100 }
 0x5b7   :  { %1461 = vsyncpa [#allocation3], 1 }
 0x5b8   :  { %1463 = vsyncpa [#allocation3 + $0x1], 1 }
 0x5b9   :  { %1464 = vsyncpa [#allocation4], 1 }
 0x5ba   :  { %1466 = vsyncpa [#allocation4 + $0x1], 1 }

</bundles_post_ra>
